<compile_context>
chip_gen: v7x
topology: tpu7x:2x2x1
jax: 0.10.0
libtpu: 0.0.40
codegen_flags: <defaults>
</compile_context>

<pallas_src>
import jax
import jax.numpy as jnp
from jax.experimental import pallas as pl
from jax.experimental.pallas import tpu as pltpu


def make_rnn_kernel(B, S, I, H, OP):
    def rnn_kernel(x_ref, wih_ref, whh_ref, b_ref, wfc_ref, bfc_ref, out_ref):
        x = x_ref[...]        # (B, S*I)   batch-first, time blocks along lanes
        wih = wih_ref[...]    # (I, H)
        whh = whh_ref[...]    # (H, H)     stays in vregs across the unrolled loop
        b = b_ref[...]        # (1, H)     b_ih + b_hh
        wfc = wfc_ref[...]    # (H, OP)    FC weight, lane-padded to OP=128
        bfc = bfc_ref[...]    # (1, OP)

        # Input projection for every timestep, hoisted off the serial path.
        # These S matmuls are independent of h, so the LLO scheduler overlaps their MXU
        # passes with the serial recurrence below.
        xw = [
            jnp.dot(x[:, t * I:(t + 1) * I], wih, preferred_element_type=jnp.float32) + b
            for t in range(S)
        ]

        # Fully-unrolled recurrence; hidden state is vreg-resident (no VMEM scratch).
        # Critical path per step: one (B,H)@(H,H) MXU pass + relu.
        h = jnp.zeros((B, H), jnp.float32)
        outs = []
        for t in range(S):
            h = jnp.maximum(
                xw[t] + jnp.dot(h, whh, preferred_element_type=jnp.float32), 0.0
            )
            # FC head for step t: depends only on h_t, overlaps with step t+1's matmul.
            outs.append(
                jnp.dot(h, wfc, preferred_element_type=jnp.float32) + bfc
            )

        # One lane-aligned concat (128-lane blocks) + a single dense, unmasked store.
        out_ref[...] = jnp.concatenate(outs, axis=1).astype(out_ref.dtype)

    return rnn_kernel


O_PAD = 128  # pad FC output channels to one full lane group → aligned, unmasked stores


@jax.jit
def rnn_forward(x, w_ih, w_hh, b_ih, b_hh, w_fc, b_fc):
    """x: (B, S, I) float32, batch_first.  Weights in PyTorch convention:
       w_ih (H, I), w_hh (H, H), b_ih (H,), b_hh (H,), w_fc (O, H), b_fc (O,)."""
    B, S, I = x.shape
    H = w_hh.shape[0]
    O = w_fc.shape[0]

    # Pre-transpose (tiny) weights so the kernel right-multiplies on the MXU; pad the FC
    # weight/bias out to O_PAD lanes so every per-step output block is 128-aligned.
    wih_t = jnp.transpose(w_ih)                                   # (I, H)
    whh_t = jnp.transpose(w_hh)                                   # (H, H)
    b_comb = (b_ih + b_hh).reshape(1, H)                          # (1, H)
    wfc_pad = jnp.zeros((H, O_PAD), x.dtype).at[:, :O].set(jnp.transpose(w_fc))
    bfc_pad = jnp.zeros((1, O_PAD), x.dtype).at[:, :O].set(b_fc)

    # Free reshape (trailing dims collapsed) — no transpose, no HBM shuffle.
    x2 = x.reshape(B, S * I)

    y_pad = pl.pallas_call(
        make_rnn_kernel(B, S, I, H, O_PAD),
        out_shape=jax.ShapeDtypeStruct((B, S * O_PAD), x.dtype),
        in_specs=[pl.BlockSpec(memory_space=pltpu.MemorySpace.VMEM)] * 6,
        out_specs=pl.BlockSpec(memory_space=pltpu.MemorySpace.VMEM),
        # Gridless + fully VMEM-resident: total footprint is well under the scoped VMEM
        # limit on v5e/v6e/v7x.  If S*B ever grows, switch to a chunked time grid with a
        # carried hidden state (and a batch-parallel axis for v7x's two TensorCores).
    )(x2, wih_t, whh_t, b_comb, wfc_pad, bfc_pad)

    # Free reshape + tiny slice (fused under jit) back to batch-first (B, S, O).
    return y_pad.reshape(B, S, O_PAD)[:, :, :O]


def rnn_reference(x, w_ih, w_hh, b_ih, b_hh, w_fc, b_fc):
    """Plain-JAX reference matching torch.nn.RNN(relu, batch_first) + Linear."""
    B, S, I = x.shape
    H = w_hh.shape[0]
    hp = jax.lax.Precision.HIGHEST

    def step(h, x_t):
        h_new = jax.nn.relu(
            jnp.dot(x_t, w_ih.T, precision=hp) + b_ih
            + jnp.dot(h, w_hh.T, precision=hp) + b_hh
        )
        return h_new, h_new

    h0 = jnp.zeros((B, H), jnp.float32)
    _, hs = jax.lax.scan(step, h0, jnp.swapaxes(x, 0, 1))   # (S, B, H)
    hs = jnp.swapaxes(hs, 0, 1)                              # (B, S, H)
    return jnp.dot(hs, w_fc.T, precision=hp) + b_fc


if __name__ == "__main__":
    # Shapes from the module's params: BSZ=16, NUM_BITS=10 (seq length & bits), HIDSIZE=4.
    B, S, I, H, O = 16, 10, 10, 4, 10

    key = jax.random.PRNGKey(0)
    ks = jax.random.split(key, 7)
    bound = 1.0 / (H ** 0.5)

    x = jax.random.normal(ks[0], (B, S, I), jnp.float32)
    w_ih = jax.random.uniform(ks[1], (H, I), jnp.float32, -bound, bound)
    w_hh = jax.random.uniform(ks[2], (H, H), jnp.float32, -bound, bound)
    b_ih = jax.random.uniform(ks[3], (H,), jnp.float32, -bound, bound)
    b_hh = jax.random.uniform(ks[4], (H,), jnp.float32, -bound, bound)
    w_fc = jax.random.uniform(ks[5], (O, H), jnp.float32, -bound, bound)
    b_fc = jax.random.uniform(ks[6], (O,), jnp.float32, -bound, bound)

    out = rnn_forward(x, w_ih, w_hh, b_ih, b_hh, w_fc, b_fc)
    out = jax.block_until_ready(out)

    ref = rnn_reference(x, w_ih, w_hh, b_ih, b_hh, w_fc, b_fc)
    assert out.shape == (B, S, O)
    assert jnp.allclose(out, ref, atol=1e-4, rtol=1e-4), "mismatch vs reference"

    print("KERNEL_OK")
</pallas_src>

<mosaic_0001>
module attributes {stable_mosaic.version = 11 : i64} {
  func.func @rnn_kernel(%arg0: memref<16x100xf32, #tpu.memory_space<vmem>>, %arg1: memref<10x4xf32, #tpu.memory_space<vmem>>, %arg2: memref<4x4xf32, #tpu.memory_space<vmem>>, %arg3: memref<1x4xf32, #tpu.memory_space<vmem>>, %arg4: memref<4x128xf32, #tpu.memory_space<vmem>>, %arg5: memref<1x128xf32, #tpu.memory_space<vmem>>, %arg6: memref<16x1280xf32, #tpu.memory_space<vmem>>) attributes {dimension_semantics = [], scalar_prefetch = 0 : i64, scratch_operands = 0 : i64, tpu.core_type = #tpu.core_type<tc>} {
    %c0 = arith.constant 0 : index
    %c0_0 = arith.constant 0 : index
    %0 = vector.load %arg0[%c0, %c0_0] : memref<16x100xf32, #tpu.memory_space<vmem>>, vector<16x100xf32>
    %c0_1 = arith.constant 0 : index
    %c0_2 = arith.constant 0 : index
    %1 = vector.load %arg1[%c0_1, %c0_2] : memref<10x4xf32, #tpu.memory_space<vmem>>, vector<10x4xf32>
    %c0_3 = arith.constant 0 : index
    %c0_4 = arith.constant 0 : index
    %2 = vector.load %arg2[%c0_3, %c0_4] : memref<4x4xf32, #tpu.memory_space<vmem>>, vector<4x4xf32>
    %c0_5 = arith.constant 0 : index
    %c0_6 = arith.constant 0 : index
    %3 = vector.load %arg3[%c0_5, %c0_6] : memref<1x4xf32, #tpu.memory_space<vmem>>, vector<1x4xf32>
    %c0_7 = arith.constant 0 : index
    %c0_8 = arith.constant 0 : index
    %4 = vector.load %arg4[%c0_7, %c0_8] : memref<4x128xf32, #tpu.memory_space<vmem>>, vector<4x128xf32>
    %c0_9 = arith.constant 0 : index
    %c0_10 = arith.constant 0 : index
    %5 = vector.load %arg5[%c0_9, %c0_10] : memref<1x128xf32, #tpu.memory_space<vmem>>, vector<1x128xf32>
    %6 = vector.extract_strided_slice %0 {offsets = [0, 0], sizes = [16, 10], strides = [1, 1]} : vector<16x100xf32> to vector<16x10xf32>
    %cst = arith.constant dense<0.000000e+00> : vector<16x4xf32>
    %7 = tpu.matmul %6, %1, %cst {dimension_numbers = #tpu.dot_dimension_numbers<[1], [0], [0], [1], [0, 0, 1, 1], [], []>} : vector<16x10xf32>, vector<10x4xf32>, vector<16x4xf32> -> vector<16x4xf32>
    %8 = vector.broadcast %3 : vector<1x4xf32> to vector<16x4xf32>
    %9 = arith.addf %7, %8 : vector<16x4xf32>
    %10 = vector.extract_strided_slice %0 {offsets = [0, 10], sizes = [16, 10], strides = [1, 1]} : vector<16x100xf32> to vector<16x10xf32>
    %cst_11 = arith.constant dense<0.000000e+00> : vector<16x4xf32>
    %11 = tpu.matmul %10, %1, %cst_11 {dimension_numbers = #tpu.dot_dimension_numbers<[1], [0], [0], [1], [0, 0, 1, 1], [], []>} : vector<16x10xf32>, vector<10x4xf32>, vector<16x4xf32> -> vector<16x4xf32>
    %12 = vector.broadcast %3 : vector<1x4xf32> to vector<16x4xf32>
    %13 = arith.addf %11, %12 : vector<16x4xf32>
    %14 = vector.extract_strided_slice %0 {offsets = [0, 20], sizes = [16, 10], strides = [1, 1]} : vector<16x100xf32> to vector<16x10xf32>
    %cst_12 = arith.constant dense<0.000000e+00> : vector<16x4xf32>
    %15 = tpu.matmul %14, %1, %cst_12 {dimension_numbers = #tpu.dot_dimension_numbers<[1], [0], [0], [1], [0, 0, 1, 1], [], []>} : vector<16x10xf32>, vector<10x4xf32>, vector<16x4xf32> -> vector<16x4xf32>
    %16 = vector.broadcast %3 : vector<1x4xf32> to vector<16x4xf32>
    %17 = arith.addf %15, %16 : vector<16x4xf32>
    %18 = vector.extract_strided_slice %0 {offsets = [0, 30], sizes = [16, 10], strides = [1, 1]} : vector<16x100xf32> to vector<16x10xf32>
    %cst_13 = arith.constant dense<0.000000e+00> : vector<16x4xf32>
    %19 = tpu.matmul %18, %1, %cst_13 {dimension_numbers = #tpu.dot_dimension_numbers<[1], [0], [0], [1], [0, 0, 1, 1], [], []>} : vector<16x10xf32>, vector<10x4xf32>, vector<16x4xf32> -> vector<16x4xf32>
    %20 = vector.broadcast %3 : vector<1x4xf32> to vector<16x4xf32>
    %21 = arith.addf %19, %20 : vector<16x4xf32>
    %22 = vector.extract_strided_slice %0 {offsets = [0, 40], sizes = [16, 10], strides = [1, 1]} : vector<16x100xf32> to vector<16x10xf32>
    %cst_14 = arith.constant dense<0.000000e+00> : vector<16x4xf32>
    %23 = tpu.matmul %22, %1, %cst_14 {dimension_numbers = #tpu.dot_dimension_numbers<[1], [0], [0], [1], [0, 0, 1, 1], [], []>} : vector<16x10xf32>, vector<10x4xf32>, vector<16x4xf32> -> vector<16x4xf32>
    %24 = vector.broadcast %3 : vector<1x4xf32> to vector<16x4xf32>
    %25 = arith.addf %23, %24 : vector<16x4xf32>
    %26 = vector.extract_strided_slice %0 {offsets = [0, 50], sizes = [16, 10], strides = [1, 1]} : vector<16x100xf32> to vector<16x10xf32>
    %cst_15 = arith.constant dense<0.000000e+00> : vector<16x4xf32>
    %27 = tpu.matmul %26, %1, %cst_15 {dimension_numbers = #tpu.dot_dimension_numbers<[1], [0], [0], [1], [0, 0, 1, 1], [], []>} : vector<16x10xf32>, vector<10x4xf32>, vector<16x4xf32> -> vector<16x4xf32>
    %28 = vector.broadcast %3 : vector<1x4xf32> to vector<16x4xf32>
    %29 = arith.addf %27, %28 : vector<16x4xf32>
    %30 = vector.extract_strided_slice %0 {offsets = [0, 60], sizes = [16, 10], strides = [1, 1]} : vector<16x100xf32> to vector<16x10xf32>
    %cst_16 = arith.constant dense<0.000000e+00> : vector<16x4xf32>
    %31 = tpu.matmul %30, %1, %cst_16 {dimension_numbers = #tpu.dot_dimension_numbers<[1], [0], [0], [1], [0, 0, 1, 1], [], []>} : vector<16x10xf32>, vector<10x4xf32>, vector<16x4xf32> -> vector<16x4xf32>
    %32 = vector.broadcast %3 : vector<1x4xf32> to vector<16x4xf32>
    %33 = arith.addf %31, %32 : vector<16x4xf32>
    %34 = vector.extract_strided_slice %0 {offsets = [0, 70], sizes = [16, 10], strides = [1, 1]} : vector<16x100xf32> to vector<16x10xf32>
    %cst_17 = arith.constant dense<0.000000e+00> : vector<16x4xf32>
    %35 = tpu.matmul %34, %1, %cst_17 {dimension_numbers = #tpu.dot_dimension_numbers<[1], [0], [0], [1], [0, 0, 1, 1], [], []>} : vector<16x10xf32>, vector<10x4xf32>, vector<16x4xf32> -> vector<16x4xf32>
    %36 = vector.broadcast %3 : vector<1x4xf32> to vector<16x4xf32>
    %37 = arith.addf %35, %36 : vector<16x4xf32>
    %38 = vector.extract_strided_slice %0 {offsets = [0, 80], sizes = [16, 10], strides = [1, 1]} : vector<16x100xf32> to vector<16x10xf32>
    %cst_18 = arith.constant dense<0.000000e+00> : vector<16x4xf32>
    %39 = tpu.matmul %38, %1, %cst_18 {dimension_numbers = #tpu.dot_dimension_numbers<[1], [0], [0], [1], [0, 0, 1, 1], [], []>} : vector<16x10xf32>, vector<10x4xf32>, vector<16x4xf32> -> vector<16x4xf32>
    %40 = vector.broadcast %3 : vector<1x4xf32> to vector<16x4xf32>
    %41 = arith.addf %39, %40 : vector<16x4xf32>
    %42 = vector.extract_strided_slice %0 {offsets = [0, 90], sizes = [16, 10], strides = [1, 1]} : vector<16x100xf32> to vector<16x10xf32>
    %cst_19 = arith.constant dense<0.000000e+00> : vector<16x4xf32>
    %43 = tpu.matmul %42, %1, %cst_19 {dimension_numbers = #tpu.dot_dimension_numbers<[1], [0], [0], [1], [0, 0, 1, 1], [], []>} : vector<16x10xf32>, vector<10x4xf32>, vector<16x4xf32> -> vector<16x4xf32>
    %44 = vector.broadcast %3 : vector<1x4xf32> to vector<16x4xf32>
    %45 = arith.addf %43, %44 : vector<16x4xf32>
    %cst_20 = arith.constant 0.000000e+00 : f32
    %46 = vector.broadcast %cst_20 : f32 to vector<16x4xf32>
    %cst_21 = arith.constant dense<0.000000e+00> : vector<16x4xf32>
    %47 = tpu.matmul %46, %2, %cst_21 {dimension_numbers = #tpu.dot_dimension_numbers<[1], [0], [0], [1], [0, 0, 1, 1], [], []>} : vector<16x4xf32>, vector<4x4xf32>, vector<16x4xf32> -> vector<16x4xf32>
    %48 = arith.addf %9, %47 : vector<16x4xf32>
    %cst_22 = arith.constant 0.000000e+00 : f32
    %49 = vector.broadcast %cst_22 : f32 to vector<16x4xf32>
    %50 = arith.maximumf %48, %49 : vector<16x4xf32>
    %cst_23 = arith.constant dense<0.000000e+00> : vector<16x128xf32>
    %51 = tpu.matmul %50, %4, %cst_23 {dimension_numbers = #tpu.dot_dimension_numbers<[1], [0], [0], [1], [0, 0, 1, 1], [], []>} : vector<16x4xf32>, vector<4x128xf32>, vector<16x128xf32> -> vector<16x128xf32>
    %52 = vector.broadcast %5 : vector<1x128xf32> to vector<16x128xf32>
    %53 = arith.addf %51, %52 : vector<16x128xf32>
    %cst_24 = arith.constant dense<0.000000e+00> : vector<16x4xf32>
    %54 = tpu.matmul %50, %2, %cst_24 {dimension_numbers = #tpu.dot_dimension_numbers<[1], [0], [0], [1], [0, 0, 1, 1], [], []>} : vector<16x4xf32>, vector<4x4xf32>, vector<16x4xf32> -> vector<16x4xf32>
    %55 = arith.addf %13, %54 : vector<16x4xf32>
    %cst_25 = arith.constant 0.000000e+00 : f32
    %56 = vector.broadcast %cst_25 : f32 to vector<16x4xf32>
    %57 = arith.maximumf %55, %56 : vector<16x4xf32>
    %cst_26 = arith.constant dense<0.000000e+00> : vector<16x128xf32>
    %58 = tpu.matmul %57, %4, %cst_26 {dimension_numbers = #tpu.dot_dimension_numbers<[1], [0], [0], [1], [0, 0, 1, 1], [], []>} : vector<16x4xf32>, vector<4x128xf32>, vector<16x128xf32> -> vector<16x128xf32>
    %59 = vector.broadcast %5 : vector<1x128xf32> to vector<16x128xf32>
    %60 = arith.addf %58, %59 : vector<16x128xf32>
    %cst_27 = arith.constant dense<0.000000e+00> : vector<16x4xf32>
    %61 = tpu.matmul %57, %2, %cst_27 {dimension_numbers = #tpu.dot_dimension_numbers<[1], [0], [0], [1], [0, 0, 1, 1], [], []>} : vector<16x4xf32>, vector<4x4xf32>, vector<16x4xf32> -> vector<16x4xf32>
    %62 = arith.addf %17, %61 : vector<16x4xf32>
    %cst_28 = arith.constant 0.000000e+00 : f32
    %63 = vector.broadcast %cst_28 : f32 to vector<16x4xf32>
    %64 = arith.maximumf %62, %63 : vector<16x4xf32>
    %cst_29 = arith.constant dense<0.000000e+00> : vector<16x128xf32>
    %65 = tpu.matmul %64, %4, %cst_29 {dimension_numbers = #tpu.dot_dimension_numbers<[1], [0], [0], [1], [0, 0, 1, 1], [], []>} : vector<16x4xf32>, vector<4x128xf32>, vector<16x128xf32> -> vector<16x128xf32>
    %66 = vector.broadcast %5 : vector<1x128xf32> to vector<16x128xf32>
    %67 = arith.addf %65, %66 : vector<16x128xf32>
    %cst_30 = arith.constant dense<0.000000e+00> : vector<16x4xf32>
    %68 = tpu.matmul %64, %2, %cst_30 {dimension_numbers = #tpu.dot_dimension_numbers<[1], [0], [0], [1], [0, 0, 1, 1], [], []>} : vector<16x4xf32>, vector<4x4xf32>, vector<16x4xf32> -> vector<16x4xf32>
    %69 = arith.addf %21, %68 : vector<16x4xf32>
    %cst_31 = arith.constant 0.000000e+00 : f32
    %70 = vector.broadcast %cst_31 : f32 to vector<16x4xf32>
    %71 = arith.maximumf %69, %70 : vector<16x4xf32>
    %cst_32 = arith.constant dense<0.000000e+00> : vector<16x128xf32>
    %72 = tpu.matmul %71, %4, %cst_32 {dimension_numbers = #tpu.dot_dimension_numbers<[1], [0], [0], [1], [0, 0, 1, 1], [], []>} : vector<16x4xf32>, vector<4x128xf32>, vector<16x128xf32> -> vector<16x128xf32>
    %73 = vector.broadcast %5 : vector<1x128xf32> to vector<16x128xf32>
    %74 = arith.addf %72, %73 : vector<16x128xf32>
    %cst_33 = arith.constant dense<0.000000e+00> : vector<16x4xf32>
    %75 = tpu.matmul %71, %2, %cst_33 {dimension_numbers = #tpu.dot_dimension_numbers<[1], [0], [0], [1], [0, 0, 1, 1], [], []>} : vector<16x4xf32>, vector<4x4xf32>, vector<16x4xf32> -> vector<16x4xf32>
    %76 = arith.addf %25, %75 : vector<16x4xf32>
    %cst_34 = arith.constant 0.000000e+00 : f32
    %77 = vector.broadcast %cst_34 : f32 to vector<16x4xf32>
    %78 = arith.maximumf %76, %77 : vector<16x4xf32>
    %cst_35 = arith.constant dense<0.000000e+00> : vector<16x128xf32>
    %79 = tpu.matmul %78, %4, %cst_35 {dimension_numbers = #tpu.dot_dimension_numbers<[1], [0], [0], [1], [0, 0, 1, 1], [], []>} : vector<16x4xf32>, vector<4x128xf32>, vector<16x128xf32> -> vector<16x128xf32>
    %80 = vector.broadcast %5 : vector<1x128xf32> to vector<16x128xf32>
    %81 = arith.addf %79, %80 : vector<16x128xf32>
    %cst_36 = arith.constant dense<0.000000e+00> : vector<16x4xf32>
    %82 = tpu.matmul %78, %2, %cst_36 {dimension_numbers = #tpu.dot_dimension_numbers<[1], [0], [0], [1], [0, 0, 1, 1], [], []>} : vector<16x4xf32>, vector<4x4xf32>, vector<16x4xf32> -> vector<16x4xf32>
    %83 = arith.addf %29, %82 : vector<16x4xf32>
    %cst_37 = arith.constant 0.000000e+00 : f32
    %84 = vector.broadcast %cst_37 : f32 to vector<16x4xf32>
    %85 = arith.maximumf %83, %84 : vector<16x4xf32>
    %cst_38 = arith.constant dense<0.000000e+00> : vector<16x128xf32>
    %86 = tpu.matmul %85, %4, %cst_38 {dimension_numbers = #tpu.dot_dimension_numbers<[1], [0], [0], [1], [0, 0, 1, 1], [], []>} : vector<16x4xf32>, vector<4x128xf32>, vector<16x128xf32> -> vector<16x128xf32>
    %87 = vector.broadcast %5 : vector<1x128xf32> to vector<16x128xf32>
    %88 = arith.addf %86, %87 : vector<16x128xf32>
    %cst_39 = arith.constant dense<0.000000e+00> : vector<16x4xf32>
    %89 = tpu.matmul %85, %2, %cst_39 {dimension_numbers = #tpu.dot_dimension_numbers<[1], [0], [0], [1], [0, 0, 1, 1], [], []>} : vector<16x4xf32>, vector<4x4xf32>, vector<16x4xf32> -> vector<16x4xf32>
    %90 = arith.addf %33, %89 : vector<16x4xf32>
    %cst_40 = arith.constant 0.000000e+00 : f32
    %91 = vector.broadcast %cst_40 : f32 to vector<16x4xf32>
    %92 = arith.maximumf %90, %91 : vector<16x4xf32>
    %cst_41 = arith.constant dense<0.000000e+00> : vector<16x128xf32>
    %93 = tpu.matmul %92, %4, %cst_41 {dimension_numbers = #tpu.dot_dimension_numbers<[1], [0], [0], [1], [0, 0, 1, 1], [], []>} : vector<16x4xf32>, vector<4x128xf32>, vector<16x128xf32> -> vector<16x128xf32>
    %94 = vector.broadcast %5 : vector<1x128xf32> to vector<16x128xf32>
    %95 = arith.addf %93, %94 : vector<16x128xf32>
    %cst_42 = arith.constant dense<0.000000e+00> : vector<16x4xf32>
    %96 = tpu.matmul %92, %2, %cst_42 {dimension_numbers = #tpu.dot_dimension_numbers<[1], [0], [0], [1], [0, 0, 1, 1], [], []>} : vector<16x4xf32>, vector<4x4xf32>, vector<16x4xf32> -> vector<16x4xf32>
    %97 = arith.addf %37, %96 : vector<16x4xf32>
    %cst_43 = arith.constant 0.000000e+00 : f32
    %98 = vector.broadcast %cst_43 : f32 to vector<16x4xf32>
    %99 = arith.maximumf %97, %98 : vector<16x4xf32>
    %cst_44 = arith.constant dense<0.000000e+00> : vector<16x128xf32>
    %100 = tpu.matmul %99, %4, %cst_44 {dimension_numbers = #tpu.dot_dimension_numbers<[1], [0], [0], [1], [0, 0, 1, 1], [], []>} : vector<16x4xf32>, vector<4x128xf32>, vector<16x128xf32> -> vector<16x128xf32>
    %101 = vector.broadcast %5 : vector<1x128xf32> to vector<16x128xf32>
    %102 = arith.addf %100, %101 : vector<16x128xf32>
    %cst_45 = arith.constant dense<0.000000e+00> : vector<16x4xf32>
    %103 = tpu.matmul %99, %2, %cst_45 {dimension_numbers = #tpu.dot_dimension_numbers<[1], [0], [0], [1], [0, 0, 1, 1], [], []>} : vector<16x4xf32>, vector<4x4xf32>, vector<16x4xf32> -> vector<16x4xf32>
    %104 = arith.addf %41, %103 : vector<16x4xf32>
    %cst_46 = arith.constant 0.000000e+00 : f32
    %105 = vector.broadcast %cst_46 : f32 to vector<16x4xf32>
    %106 = arith.maximumf %104, %105 : vector<16x4xf32>
    %cst_47 = arith.constant dense<0.000000e+00> : vector<16x128xf32>
    %107 = tpu.matmul %106, %4, %cst_47 {dimension_numbers = #tpu.dot_dimension_numbers<[1], [0], [0], [1], [0, 0, 1, 1], [], []>} : vector<16x4xf32>, vector<4x128xf32>, vector<16x128xf32> -> vector<16x128xf32>
    %108 = vector.broadcast %5 : vector<1x128xf32> to vector<16x128xf32>
    %109 = arith.addf %107, %108 : vector<16x128xf32>
    %cst_48 = arith.constant dense<0.000000e+00> : vector<16x4xf32>
    %110 = tpu.matmul %106, %2, %cst_48 {dimension_numbers = #tpu.dot_dimension_numbers<[1], [0], [0], [1], [0, 0, 1, 1], [], []>} : vector<16x4xf32>, vector<4x4xf32>, vector<16x4xf32> -> vector<16x4xf32>
    %111 = arith.addf %45, %110 : vector<16x4xf32>
    %cst_49 = arith.constant 0.000000e+00 : f32
    %112 = vector.broadcast %cst_49 : f32 to vector<16x4xf32>
    %113 = arith.maximumf %111, %112 : vector<16x4xf32>
    %cst_50 = arith.constant dense<0.000000e+00> : vector<16x128xf32>
    %114 = tpu.matmul %113, %4, %cst_50 {dimension_numbers = #tpu.dot_dimension_numbers<[1], [0], [0], [1], [0, 0, 1, 1], [], []>} : vector<16x4xf32>, vector<4x128xf32>, vector<16x128xf32> -> vector<16x128xf32>
    %115 = vector.broadcast %5 : vector<1x128xf32> to vector<16x128xf32>
    %116 = arith.addf %114, %115 : vector<16x128xf32>
    %117 = tpu.concatenate %53, %60, %67, %74, %81, %88, %95, %102, %109, %116 in 1 : vector<16x128xf32>, vector<16x128xf32>, vector<16x128xf32>, vector<16x128xf32>, vector<16x128xf32>, vector<16x128xf32>, vector<16x128xf32>, vector<16x128xf32>, vector<16x128xf32>, vector<16x128xf32> -> vector<16x1280xf32>
    %c0_51 = arith.constant 0 : index
    %c0_52 = arith.constant 0 : index
    %118 = vector.load %arg6[%c0_51, %c0_52] : memref<16x1280xf32, #tpu.memory_space<vmem>>, vector<16x1280xf32>
    tpu.vector_store %arg6[%c0_51, %c0_52], %117 {strides = array<i32>} : memref<16x1280xf32, #tpu.memory_space<vmem>>, vector<16x1280xf32>,
    return
  }
}

</mosaic_0001>

<bundles_post_ra>
// kernel: rnn_forward.1
= control target key start
LH: loop header
LB: loop body
LE: loop exit
PB: predicated region body
PF: predicated region fallthrough
CT: control target
= control target key end

     0   :  { %vm44_vm0 = vcmask 1041408   ;;  %vm37_vm1 = vcmask 80896   ;;  %s2982_s25 = smov 108   ;;  %s2983_s26 = smov 88   ;;  %vm2984_vm2 = vmmov 1   ;;  %vm874_vm4 = vcmask 1043456   ;;  %s3364_s0 = inlined_call_operand.vmem [shape: f32[16,100], index: 0, kind: input, shape index: {}]   ;;  %s3365_s1 = inlined_call_operand.vmem [shape: f32[10,4], index: 1, kind: input, shape index: {}]   ;;  %s3366_s2 = inlined_call_operand.vmem [shape: f32[4,4], index: 2, kind: input, shape index: {}]   ;;  %s3367_s4 = inlined_call_operand.vmem [shape: f32[4,128], index: 4, kind: input, shape index: {}]   ;;  %s3368_s3 = inlined_call_operand.vmem [shape: f32[1,4], index: 3, kind: input, shape index: {}]   ;;  %s3369_s5 = inlined_call_operand.vmem [shape: f32[1,128], index: 5, kind: input, shape index: {}]   ;;  %s3370_s6 = inlined_call_operand.vmem [shape: f32[16,1280], index: 6, kind: output, shape index: {}]  }
   0x1   :  { %v23_v0 = vld [vmem:[%s3364_s0] sm:$0xff]  ;;  %v26_v2 = vld [vmem:[%s3365_s1 + $0x8] sm:$0x3]  ;;  %vm3037_vm3 = vmpackc.low %vm44_vm0, %vm2984_vm2  ;;  %s2987_s7 = smov 118   ;;  %s2988_s8 = smov 98   ;;  %v2992_v17 = vmov 0.0  }
   0x2   :  { %v25_v1 = vld [vmem:[%s3365_s1] sm:$0xff]  ;;  %206 = vrot.lane.b32.xlu0 %v23_v0, %s2982_s25  ;;  %372 = vrot.lane.b32.xlu1 %v23_v0, %s2983_s26  ;;  %v24_v4 = vld [vmem:[%s3364_s0 + $0x8] sm:$0xff]  ;;  %s2985_s0 = smov 68   ;;  %s2986_s1 = smov 48   ;;  %vm870_vm5 = vcmask 31744  }
   0x3   :  { %v3044_v5 = vpack.c.bf16 %v26_v2, %v25_v1  ;;  %2705 = vmatprep.mubr.msk.f32.mxu0 %vm37_vm1, %v23_v0  ;;  %s2989_s9 = smov 78   ;;  %s2990_s10 = smov 58   ;;  %v3092_v14 = vld [vmem:[%s3366_s2] sm:$0xf] }
   0x4   :  { %s2991_s11 = smov 38   ;;  %v3138_v26 = vld [vmem:[%s3367_s4] sm:$0xf] }
   0x5   :  { %2873 = vmatprep.subr.msk.bf16.mxu0 %vm3037_vm3, %v3044_v5  ;;  %2879 = vmatprep.subr.msk.bf16.mxu1 %vm3037_vm3, %v3044_v5  ;;  %v3155_v27 = vld [vmem:[%s3368_s3] ss:$0 sm:$0xff] }
   0x6   :  { %208 = vrot.lane.b32.xlu0 %v24_v4, %s2982_s25  ;;  %374 = vrot.lane.b32.xlu1 %v24_v4, %s2983_s26  ;;  %v3174_v34 = vld [vmem:[%s3369_s5] ss:$0 sm:$0xff] }
   0x7   :  { %2876 = vmatpush3.bf16.msk.msra.mxu0 %vm3037_vm3, %v3044_v5  ;;  %2882 = vmatpush3.bf16.msk.msra.mxu1 %vm3037_vm3, %v3044_v5 }
   0x8   :  { %2885 = vmatprep.subr.msk.bf16.mxu0 %vm3037_vm3, %v3044_v5  ;;  %2891 = vmatprep.subr.msk.bf16.mxu1 %vm3037_vm3, %v3044_v5 }
   0xa   :  { %538 = vrot.lane.b32.xlu0 %v23_v0, %s2985_s0  ;;  %540 = vrot.lane.b32.xlu1 %v24_v4, %s2985_s0 }
   0xb   :  { %2706 = vmatmul.mubr.msk.f32.vlgmr.msra.gmra.mrb[0].mxu0 %vm37_vm1, %v24_v4 }
   0xc   :  { %2888 = vmatpush3.bf16.msk.msra.mxu0 %vm3037_vm3, %v3044_v5 }
   0xd   :  { %2897 = vmatprep.subr.msk.bf16.mxu0 %vm3037_vm3, %v3044_v5 }
   0xe   :  { %704 = vrot.lane.b32.xlu0 %v23_v0, %s2986_s1  ;;  %706 = vrot.lane.b32.xlu1 %v24_v4, %s2986_s1 }
  0x12   :  { %123 = vrot.lane.b32.xlu0 %v23_v0, %s2987_s7  ;;  %125 = vrot.lane.b32.xlu1 %v24_v4, %s2987_s7 }
  0x16   :  { %289 = vrot.lane.b32.xlu0 %v23_v0, %s2988_s8  ;;  %291 = vrot.lane.b32.xlu1 %v24_v4, %s2988_s8 }
  0x1a   :  { %455 = vrot.lane.b32.xlu0 %v23_v0, %s2989_s9  ;;  %457 = vrot.lane.b32.xlu1 %v24_v4, %s2989_s9 }
  0x1e   :  { %621 = vrot.lane.b32.xlu0 %v23_v0, %s2990_s10  ;;  %623 = vrot.lane.b32.xlu1 %v24_v4, %s2990_s10 }
  0x22   :  { %787 = vrot.lane.b32.xlu0 %v23_v0, %s2991_s11  ;;  %789 = vrot.lane.b32.xlu1 %v24_v4, %s2991_s11 }
  0x74   :  { %v207_v6 = vpop.permute.xlu0 %206  ;;  %v373_v7 = vpop.permute.xlu1 %372 }
  0x75   :  { %2719 = vmatprep.mubr.msk.f32.mxu0 %vm37_vm1, %v207_v6 }
  0x78   :  { %v209_v8 = vpop.permute.xlu0 %208  ;;  %v375_v9 = vpop.permute.xlu1 %374 }
  0x79   :  { %2720 = vmatmul.mubr.msk.f32.vlgmr.msra.gmra.mrb[2].mxu0 %vm37_vm1, %v209_v8 }
  0x7a   :  { %2900 = vmatpush3.bf16.msk.msra.mxu0 %vm3037_vm3, %v3044_v5  ;;  %2733 = vmatprep.mubr.msk.f32.mxu0 %vm37_vm1, %v373_v7 }
  0x7b   :  { %2909 = vmatprep.subr.msk.bf16.mxu0 %vm3037_vm3, %v3044_v5 }
  0x7c   :  { %v539_v10 = vpop.permute.xlu0 %538  ;;  %v541_v11 = vpop.permute.xlu1 %540 }
  0x7d   :  { %2734 = vmatmul.mubr.msk.f32.vlgmr.msra.gmra.mrb[4].mxu0 %vm37_vm1, %v375_v9 }
  0x7e   :  { %2912 = vmatpush3.bf16.msk.msra.mxu0 %vm3037_vm3, %v3044_v5  ;;  %2747 = vmatprep.mubr.msk.f32.mxu0 %vm37_vm1, %v539_v10 }
  0x7f   :  { %2921 = vmatprep.subr.msk.bf16.mxu0 %vm3037_vm3, %v3044_v5 }
  0x80   :  { %v705_v12 = vpop.permute.xlu0 %704  ;;  %v707_v13 = vpop.permute.xlu1 %706 }
  0x81   :  { %2748 = vmatmul.mubr.msk.f32.vlgmr.msra.gmra.mrb[6].mxu0 %vm37_vm1, %v541_v11 }
  0x82   :  { %2924 = vmatpush3.bf16.msk.msra.mxu0 %vm3037_vm3, %v3044_v5  ;;  %2761 = vmatprep.mubr.msk.f32.mxu0 %vm37_vm1, %v705_v12 }
  0x83   :  { %2771 = vmatprep.subr.msk.mxu0 %vm874_vm4, %v3092_v14 }
  0x84   :  { %v124_v15 = vpop.permute.xlu0 %123  ;;  %v126_v16 = vpop.permute.xlu1 %125 }
  0x85   :  { %2762 = vmatmul.mubr.msk.f32.vlgmr.msra.gmra.mrb[8].mxu0 %vm37_vm1, %v707_v13  ;;  %2712 = vmatprep.mubr.msk.f32.mxu1 %vm37_vm1, %v124_v15 }
  0x86   :  { %2772 = vmatpush3.msk.msra.mxu0 %vm874_vm4, %v3092_v14  ;;  %2773 = vmatprep.mubr.f32.mxu0 %v2992_v17 }
  0x87   :  { %2713 = vmatmul.mubr.msk.f32.vlgmr.msra.gmra.mrb[0].mxu1 %vm37_vm1, %v126_v16  ;;  %2786 = vmatprep.subr.msk.mxu0 %vm874_vm4, %v3138_v26 }
  0x88   :  { %2894 = vmatpush3.bf16.msk.msra.mxu1 %vm3037_vm3, %v3044_v5  ;;  %v290_v18 = vpop.permute.xlu0 %289  ;;  %v292_v19 = vpop.permute.xlu1 %291 }
  0x89   :  { %2774 = vmatmul.mubr.f32.vlgmr.msra.gmra.mrb[0].mxu0 %v2992_v17  ;;  %2726 = vmatprep.mubr.msk.f32.mxu1 %vm37_vm1, %v290_v18 }
  0x8a   :  { %2903 = vmatprep.subr.msk.bf16.mxu1 %vm3037_vm3, %v3044_v5  ;;  %2787 = vmatpush3.msk.msra.mxu0 %vm874_vm4, %v3138_v26 }
  0x8b   :  { %2727 = vmatmul.mubr.msk.f32.vlgmr.msra.gmra.mrb[2].mxu1 %vm37_vm1, %v292_v19  ;;  %2791 = vmatprep.subr.msk.mxu0 %vm874_vm4, %v3092_v14 }
  0x8c   :  { %2906 = vmatpush3.bf16.msk.msra.mxu1 %vm3037_vm3, %v3044_v5  ;;  %v456_v20 = vpop.permute.xlu0 %455  ;;  %v458_v21 = vpop.permute.xlu1 %457 }
  0x8d   :  { %2740 = vmatprep.mubr.msk.f32.mxu1 %vm37_vm1, %v456_v20  ;;  %2915 = vmatprep.subr.msk.bf16.mxu1 %vm3037_vm3, %v3044_v5 }
  0x8f   :  { %2741 = vmatmul.mubr.msk.f32.vlgmr.msra.gmra.mrb[4].mxu1 %vm37_vm1, %v458_v21 }
  0x90   :  { %2918 = vmatpush3.bf16.msk.msra.mxu1 %vm3037_vm3, %v3044_v5  ;;  %v622_v22 = vpop.permute.xlu0 %621  ;;  %v624_v23 = vpop.permute.xlu1 %623 }
  0x91   :  { %2754 = vmatprep.mubr.msk.f32.mxu1 %vm37_vm1, %v622_v22  ;;  %2927 = vmatprep.subr.msk.bf16.mxu1 %vm3037_vm3, %v3044_v5 }
  0x93   :  { %2755 = vmatmul.mubr.msk.f32.vlgmr.msra.gmra.mrb[6].mxu1 %vm37_vm1, %v624_v23 }
  0x94   :  { %2930 = vmatpush3.bf16.msk.msra.mxu1 %vm3037_vm3, %v3044_v5  ;;  %v788_v24 = vpop.permute.xlu0 %787  ;;  %v790_v25 = vpop.permute.xlu1 %789 }
  0x95   :  { %2768 = vmatprep.mubr.msk.f32.mxu1 %vm37_vm1, %v788_v24  ;;  %2776 = vmatprep.subr.msk.mxu1 %vm874_vm4, %v3138_v26 }
  0x97   :  { %2769 = vmatmul.mubr.msk.f32.vlgmr.msra.gmra.mrb[8].mxu1 %vm37_vm1, %v790_v25 }
  0x98   :  { %2777 = vmatpush3.msk.msra.mxu1 %vm874_vm4, %v3138_v26 }
  0x99   :  { %2781 = vmatprep.subr.msk.mxu1 %vm874_vm4, %v3092_v14 }
 0x15c   :  { %v2775_v28 = vpop.f32.mrb[0].mxu0 }
 0x15d   :  { %v2931_v29 = vadd.f32 %v2775_v28, %v3155_v27  ;;  %v944_v30 = vpop.f32.mrb[1].mxu0 }
 0x15e   :  { %v2932_v31 = vadd.f32 %v3155_v27, %v944_v30 }
 0x15f   :  { %v956_v33 = vmax.f32 %v2931_v29, 0.0 }
 0x160   :  { %v955_v32 = vmax.f32 %v2932_v31, 0.0 }
 0x162   :  { %2778 = vmatprep.mubr.msk.f32.mxu1 %vm870_vm5, %v955_v32 }
 0x163   :  { %2779 = vmatmul.mubr.msk.f32.vlgmr.msra.gmra.mrb[10].mxu1 %vm870_vm5, %v956_v33 }
 0x164   :  { %2782 = vmatpush3.msk.msra.mxu1 %vm874_vm4, %v3092_v14  ;;  %2783 = vmatprep.mubr.msk.f32.mxu1 %vm870_vm5, %v955_v32 }
 0x165   :  { %2796 = vmatprep.subr.msk.mxu1 %vm874_vm4, %v3138_v26 }
 0x167   :  { %2784 = vmatmul.mubr.msk.f32.vlgmr.msra.gmra.mrb[0].mxu1 %vm870_vm5, %v956_v33 }
 0x168   :  { %2797 = vmatpush3.msk.msra.mxu1 %vm874_vm4, %v3138_v26 }
 0x169   :  { %2801 = vmatprep.subr.msk.mxu1 %vm874_vm4, %v3092_v14 }
 0x236   :  { %v2780_v35 = vpop.f32.mrb[10].mxu1 }
 0x237   :  { %v1044_v36 = vadd.f32 %v2780_v35, %v3174_v34  ;;  %v1038_v37 = vpop.f32.mrb[11].mxu1 }
 0x238   :  { %v1039_v38 = vadd.f32 %v3174_v34, %v1038_v37 }
 0x239   :  { %2497 = vst [vmem:[%s3370_s6 + $0x50] sm:$0xff] %v1044_v36 }
 0x23a   :  { %2487 = vst [vmem:[%s3370_s6] sm:$0xff] %v1039_v38  ;;  %v2785_v39 = vpop.f32.mrb[0].mxu1 }
 0x23b   :  { %v2933_v40 = vadd.f32 %v2785_v39, %v3155_v27  ;;  %v1113_v41 = vpop.f32.mrb[1].mxu1 }
 0x23c   :  { %v2934_v42 = vadd.f32 %v3155_v27, %v1113_v41 }
 0x23d   :  { %v1125_v44 = vmax.f32 %v2933_v40, 0.0 }
 0x23e   :  { %v1124_v43 = vmax.f32 %v2934_v42, 0.0 }
 0x240   :  { %2788 = vmatprep.mubr.msk.f32.mxu0 %vm870_vm5, %v1124_v43 }
 0x241   :  { %2789 = vmatmul.mubr.msk.f32.vlgmr.msra.gmra.mrb[10].mxu0 %vm870_vm5, %v1125_v44 }
 0x242   :  { %2792 = vmatpush3.msk.msra.mxu0 %vm874_vm4, %v3092_v14  ;;  %2793 = vmatprep.mubr.msk.f32.mxu0 %vm870_vm5, %v1124_v43 }
 0x243   :  { %2806 = vmatprep.subr.msk.mxu0 %vm874_vm4, %v3138_v26 }
 0x245   :  { %2794 = vmatmul.mubr.msk.f32.vlgmr.msra.gmra.mrb[2].mxu0 %vm870_vm5, %v1125_v44 }
 0x246   :  { %2807 = vmatpush3.msk.msra.mxu0 %vm874_vm4, %v3138_v26 }
 0x247   :  { %2811 = vmatprep.subr.msk.mxu0 %vm874_vm4, %v3092_v14 }
 0x314   :  { %v2790_v45 = vpop.f32.mrb[10].mxu0 }
 0x315   :  { %v1204_v46 = vadd.f32 %v2790_v45, %v3174_v34  ;;  %v1198_v47 = vpop.f32.mrb[11].mxu0 }
 0x316   :  { %v1199_v48 = vadd.f32 %v3174_v34, %v1198_v47 }
 0x317   :  { %2498 = vst [vmem:[%s3370_s6 + $0x58] sm:$0xff] %v1204_v46 }
 0x318   :  { %2488 = vst [vmem:[%s3370_s6 + $0x8] sm:$0xff] %v1199_v48  ;;  %v2795_v49 = vpop.f32.mrb[2].mxu0 }
 0x319   :  { %v2935_v50 = vadd.f32 %v2795_v49, %v3155_v27  ;;  %v1273_v51 = vpop.f32.mrb[3].mxu0 }
 0x31a   :  { %v2936_v52 = vadd.f32 %v3155_v27, %v1273_v51 }
 0x31b   :  { %v1285_v54 = vmax.f32 %v2935_v50, 0.0 }
 0x31c   :  { %v1284_v53 = vmax.f32 %v2936_v52, 0.0 }
 0x31e   :  { %2798 = vmatprep.mubr.msk.f32.mxu1 %vm870_vm5, %v1284_v53 }
 0x31f   :  { %2799 = vmatmul.mubr.msk.f32.vlgmr.msra.gmra.mrb[12].mxu1 %vm870_vm5, %v1285_v54 }
 0x320   :  { %2802 = vmatpush3.msk.msra.mxu1 %vm874_vm4, %v3092_v14  ;;  %2803 = vmatprep.mubr.msk.f32.mxu1 %vm870_vm5, %v1284_v53 }
 0x321   :  { %2816 = vmatprep.subr.msk.mxu1 %vm874_vm4, %v3138_v26 }
 0x323   :  { %2804 = vmatmul.mubr.msk.f32.vlgmr.msra.gmra.mrb[2].mxu1 %vm870_vm5, %v1285_v54 }
 0x324   :  { %2817 = vmatpush3.msk.msra.mxu1 %vm874_vm4, %v3138_v26 }
 0x325   :  { %2821 = vmatprep.subr.msk.mxu1 %vm874_vm4, %v3092_v14 }
 0x3f2   :  { %v2800_v55 = vpop.f32.mrb[12].mxu1 }
 0x3f3   :  { %v1364_v56 = vadd.f32 %v2800_v55, %v3174_v34  ;;  %v1358_v57 = vpop.f32.mrb[13].mxu1 }
 0x3f4   :  { %v1359_v58 = vadd.f32 %v3174_v34, %v1358_v57 }
 0x3f5   :  { %2499 = vst [vmem:[%s3370_s6 + $0x60] sm:$0xff] %v1364_v56 }
 0x3f6   :  { %2489 = vst [vmem:[%s3370_s6 + $0x10] sm:$0xff] %v1359_v58  ;;  %v2805_v59 = vpop.f32.mrb[2].mxu1 }
 0x3f7   :  { %v2937_v60 = vadd.f32 %v2805_v59, %v3155_v27  ;;  %v1433_v61 = vpop.f32.mrb[3].mxu1 }
 0x3f8   :  { %v2938_v62 = vadd.f32 %v3155_v27, %v1433_v61 }
 0x3f9   :  { %v1445_v0 = vmax.f32 %v2937_v60, 0.0 }
 0x3fa   :  { %v1444_v63 = vmax.f32 %v2938_v62, 0.0 }
 0x3fc   :  { %2808 = vmatprep.mubr.msk.f32.mxu0 %vm870_vm5, %v1444_v63 }
 0x3fd   :  { %2809 = vmatmul.mubr.msk.f32.vlgmr.msra.gmra.mrb[12].mxu0 %vm870_vm5, %v1445_v0 }
 0x3fe   :  { %2812 = vmatpush3.msk.msra.mxu0 %vm874_vm4, %v3092_v14  ;;  %2813 = vmatprep.mubr.msk.f32.mxu0 %vm870_vm5, %v1444_v63 }
 0x3ff   :  { %2826 = vmatprep.subr.msk.mxu0 %vm874_vm4, %v3138_v26 }
 0x401   :  { %2814 = vmatmul.mubr.msk.f32.vlgmr.msra.gmra.mrb[4].mxu0 %vm870_vm5, %v1445_v0 }
 0x402   :  { %2827 = vmatpush3.msk.msra.mxu0 %vm874_vm4, %v3138_v26 }
 0x403   :  { %2831 = vmatprep.subr.msk.mxu0 %vm874_vm4, %v3092_v14 }
 0x4d0   :  { %v2810_v1 = vpop.f32.mrb[12].mxu0 }
 0x4d1   :  { %v1524_v2 = vadd.f32 %v2810_v1, %v3174_v34  ;;  %v1518_v3 = vpop.f32.mrb[13].mxu0 }
 0x4d2   :  { %v1519_v4 = vadd.f32 %v3174_v34, %v1518_v3 }
 0x4d3   :  { %2500 = vst [vmem:[%s3370_s6 + $0x68] sm:$0xff] %v1524_v2 }
 0x4d4   :  { %2490 = vst [vmem:[%s3370_s6 + $0x18] sm:$0xff] %v1519_v4  ;;  %v2815_v5 = vpop.f32.mrb[4].mxu0 }
 0x4d5   :  { %v2939_v6 = vadd.f32 %v2815_v5, %v3155_v27  ;;  %v1593_v7 = vpop.f32.mrb[5].mxu0 }
 0x4d6   :  { %v2940_v8 = vadd.f32 %v3155_v27, %v1593_v7 }
 0x4d7   :  { %v1605_v10 = vmax.f32 %v2939_v6, 0.0 }
 0x4d8   :  { %v1604_v9 = vmax.f32 %v2940_v8, 0.0 }
 0x4da   :  { %2818 = vmatprep.mubr.msk.f32.mxu1 %vm870_vm5, %v1604_v9 }
 0x4db   :  { %2819 = vmatmul.mubr.msk.f32.vlgmr.msra.gmra.mrb[14].mxu1 %vm870_vm5, %v1605_v10 }
 0x4dc   :  { %2822 = vmatpush3.msk.msra.mxu1 %vm874_vm4, %v3092_v14  ;;  %2823 = vmatprep.mubr.msk.f32.mxu1 %vm870_vm5, %v1604_v9 }
 0x4dd   :  { %2836 = vmatprep.subr.msk.mxu1 %vm874_vm4, %v3138_v26 }
 0x4df   :  { %2824 = vmatmul.mubr.msk.f32.vlgmr.msra.gmra.mrb[4].mxu1 %vm870_vm5, %v1605_v10 }
 0x4e0   :  { %2837 = vmatpush3.msk.msra.mxu1 %vm874_vm4, %v3138_v26 }
 0x4e1   :  { %2841 = vmatprep.subr.msk.mxu1 %vm874_vm4, %v3092_v14 }
 0x5ae   :  { %v2820_v11 = vpop.f32.mrb[14].mxu1 }
 0x5af   :  { %v1684_v12 = vadd.f32 %v2820_v11, %v3174_v34  ;;  %v1678_v13 = vpop.f32.mrb[15].mxu1 }
 0x5b0   :  { %v1679_v15 = vadd.f32 %v3174_v34, %v1678_v13 }
 0x5b1   :  { %2501 = vst [vmem:[%s3370_s6 + $0x70] sm:$0xff] %v1684_v12 }
 0x5b2   :  { %2491 = vst [vmem:[%s3370_s6 + $0x20] sm:$0xff] %v1679_v15  ;;  %v2825_v16 = vpop.f32.mrb[4].mxu1 }
 0x5b3   :  { %v2941_v17 = vadd.f32 %v2825_v16, %v3155_v27  ;;  %v1753_v18 = vpop.f32.mrb[5].mxu1 }
 0x5b4   :  { %v2942_v19 = vadd.f32 %v3155_v27, %v1753_v18 }
 0x5b5   :  { %v1765_v21 = vmax.f32 %v2941_v17, 0.0 }
 0x5b6   :  { %v1764_v20 = vmax.f32 %v2942_v19, 0.0 }
 0x5b8   :  { %2828 = vmatprep.mubr.msk.f32.mxu0 %vm870_vm5, %v1764_v20 }
 0x5b9   :  { %2829 = vmatmul.mubr.msk.f32.vlgmr.msra.gmra.mrb[14].mxu0 %vm870_vm5, %v1765_v21 }
 0x5ba   :  { %2832 = vmatpush3.msk.msra.mxu0 %vm874_vm4, %v3092_v14  ;;  %2833 = vmatprep.mubr.msk.f32.mxu0 %vm870_vm5, %v1764_v20 }
 0x5bb   :  { %2846 = vmatprep.subr.msk.mxu0 %vm874_vm4, %v3138_v26 }
 0x5bd   :  { %2834 = vmatmul.mubr.msk.f32.vlgmr.msra.gmra.mrb[6].mxu0 %vm870_vm5, %v1765_v21 }
 0x5be   :  { %2847 = vmatpush3.msk.msra.mxu0 %vm874_vm4, %v3138_v26 }
 0x5bf   :  { %2851 = vmatprep.subr.msk.mxu0 %vm874_vm4, %v3092_v14 }
 0x68c   :  { %v2830_v22 = vpop.f32.mrb[14].mxu0 }
 0x68d   :  { %v1844_v23 = vadd.f32 %v2830_v22, %v3174_v34  ;;  %v1838_v24 = vpop.f32.mrb[15].mxu0 }
 0x68e   :  { %v1839_v25 = vadd.f32 %v3174_v34, %v1838_v24 }
 0x68f   :  { %2502 = vst [vmem:[%s3370_s6 + $0x78] sm:$0xff] %v1844_v23 }
 0x690   :  { %2492 = vst [vmem:[%s3370_s6 + $0x28] sm:$0xff] %v1839_v25  ;;  %v2835_v28 = vpop.f32.mrb[6].mxu0 }
 0x691   :  { %v2943_v29 = vadd.f32 %v2835_v28, %v3155_v27  ;;  %v1913_v30 = vpop.f32.mrb[7].mxu0 }
 0x692   :  { %v2944_v31 = vadd.f32 %v3155_v27, %v1913_v30 }
 0x693   :  { %v1925_v33 = vmax.f32 %v2943_v29, 0.0 }
 0x694   :  { %v1924_v32 = vmax.f32 %v2944_v31, 0.0 }
 0x696   :  { %2838 = vmatprep.mubr.msk.f32.mxu1 %vm870_vm5, %v1924_v32 }
 0x697   :  { %2839 = vmatmul.mubr.msk.f32.vlgmr.msra.gmra.mrb[16].mxu1 %vm870_vm5, %v1925_v33 }
 0x698   :  { %2842 = vmatpush3.msk.msra.mxu1 %vm874_vm4, %v3092_v14  ;;  %2843 = vmatprep.mubr.msk.f32.mxu1 %vm870_vm5, %v1924_v32 }
 0x699   :  { %2856 = vmatprep.subr.msk.mxu1 %vm874_vm4, %v3138_v26 }
 0x69b   :  { %2844 = vmatmul.mubr.msk.f32.vlgmr.msra.gmra.mrb[6].mxu1 %vm870_vm5, %v1925_v33 }
 0x69c   :  { %2857 = vmatpush3.msk.msra.mxu1 %vm874_vm4, %v3138_v26 }
 0x69d   :  { %2861 = vmatprep.subr.msk.mxu1 %vm874_vm4, %v3092_v14 }
 0x76a   :  { %v2840_v35 = vpop.f32.mrb[16].mxu1 }
 0x76b   :  { %v2004_v36 = vadd.f32 %v2840_v35, %v3174_v34  ;;  %v1998_v37 = vpop.f32.mrb[17].mxu1 }
 0x76c   :  { %v1999_v38 = vadd.f32 %v3174_v34, %v1998_v37 }
 0x76d   :  { %2503 = vst [vmem:[%s3370_s6 + $0x80] sm:$0xff] %v2004_v36 }
 0x76e   :  { %2493 = vst [vmem:[%s3370_s6 + $0x30] sm:$0xff] %v1999_v38  ;;  %v2845_v39 = vpop.f32.mrb[6].mxu1 }
 0x76f   :  { %v2945_v40 = vadd.f32 %v2845_v39, %v3155_v27  ;;  %v2073_v41 = vpop.f32.mrb[7].mxu1 }
 0x770   :  { %v2946_v42 = vadd.f32 %v3155_v27, %v2073_v41 }
 0x771   :  { %v2085_v44 = vmax.f32 %v2945_v40, 0.0 }
 0x772   :  { %v2084_v43 = vmax.f32 %v2946_v42, 0.0 }
 0x774   :  { %2848 = vmatprep.mubr.msk.f32.mxu0 %vm870_vm5, %v2084_v43 }
 0x775   :  { %2849 = vmatmul.mubr.msk.f32.vlgmr.msra.gmra.mrb[16].mxu0 %vm870_vm5, %v2085_v44 }
 0x776   :  { %2852 = vmatpush3.msk.msra.mxu0 %vm874_vm4, %v3092_v14  ;;  %2853 = vmatprep.mubr.msk.f32.mxu0 %vm870_vm5, %v2084_v43 }
 0x777   :  { %2866 = vmatprep.subr.msk.mxu0 %vm874_vm4, %v3138_v26 }
 0x779   :  { %2854 = vmatmul.mubr.msk.f32.vlgmr.msra.gmra.mrb[8].mxu0 %vm870_vm5, %v2085_v44 }
 0x77a   :  { %2867 = vmatpush3.msk.msra.mxu0 %vm874_vm4, %v3138_v26 }
 0x848   :  { %v2850_v45 = vpop.f32.mrb[16].mxu0 }
 0x849   :  { %v2164_v46 = vadd.f32 %v2850_v45, %v3174_v34  ;;  %v2158_v47 = vpop.f32.mrb[17].mxu0 }
 0x84a   :  { %v2159_v48 = vadd.f32 %v3174_v34, %v2158_v47 }
 0x84b   :  { %2504 = vst [vmem:[%s3370_s6 + $0x88] sm:$0xff] %v2164_v46 }
 0x84c   :  { %2494 = vst [vmem:[%s3370_s6 + $0x38] sm:$0xff] %v2159_v48  ;;  %v2855_v49 = vpop.f32.mrb[8].mxu0 }
 0x84d   :  { %v2947_v50 = vadd.f32 %v2855_v49, %v3155_v27  ;;  %v2233_v51 = vpop.f32.mrb[9].mxu0 }
 0x84e   :  { %v2948_v26 = vadd.f32 %v3155_v27, %v2233_v51 }
 0x84f   :  { %v2245_v53 = vmax.f32 %v2947_v50, 0.0 }
 0x850   :  { %v2244_v52 = vmax.f32 %v2948_v26, 0.0 }
 0x852   :  { %2858 = vmatprep.mubr.msk.f32.mxu1 %vm870_vm5, %v2244_v52 }
 0x853   :  { %2859 = vmatmul.mubr.msk.f32.vlgmr.msra.gmra.mrb[18].mxu1 %vm870_vm5, %v2245_v53 }
 0x854   :  { %2862 = vmatpush3.msk.msra.mxu1 %vm874_vm4, %v3092_v14  ;;  %2863 = vmatprep.mubr.msk.f32.mxu1 %vm870_vm5, %v2244_v52 }
 0x857   :  { %2864 = vmatmul.mubr.msk.f32.vlgmr.msra.gmra.mrb[8].mxu1 %vm870_vm5, %v2245_v53 }
 0x926   :  { %v2860_v54 = vpop.f32.mrb[18].mxu1 }
 0x927   :  { %v2324_v55 = vadd.f32 %v2860_v54, %v3174_v34  ;;  %v2318_v56 = vpop.f32.mrb[19].mxu1 }
 0x928   :  { %v2319_v57 = vadd.f32 %v3174_v34, %v2318_v56 }
 0x929   :  { %2505 = vst [vmem:[%s3370_s6 + $0x90] sm:$0xff] %v2324_v55 }
 0x92a   :  { %2495 = vst [vmem:[%s3370_s6 + $0x40] sm:$0xff] %v2319_v57  ;;  %v2865_v58 = vpop.f32.mrb[8].mxu1 }
 0x92b   :  { %v2949_v14 = vadd.f32 %v2865_v58, %v3155_v27  ;;  %v2393_v59 = vpop.f32.mrb[9].mxu1 }
 0x92c   :  { %v2950_v60 = vadd.f32 %v3155_v27, %v2393_v59 }
 0x92d   :  { %v2405_v62 = vmax.f32 %v2949_v14, 0.0 }
 0x92e   :  { %v2404_v61 = vmax.f32 %v2950_v60, 0.0 }
 0x930   :  { %2868 = vmatprep.mubr.msk.f32.mxu0 %vm870_vm5, %v2404_v61 }
 0x931   :  { %2869 = vmatmul.mubr.msk.f32.vlgmr.msra.gmra.mrb[18].mxu0 %vm870_vm5, %v2405_v62 }
 0xa04   :  { %v2870_v63 = vpop.f32.mrb[18].mxu0 }
 0xa05   :  { %v2484_v0 = vadd.f32 %v2870_v63, %v3174_v34  ;;  %v2478_v1 = vpop.f32.mrb[19].mxu0 }
 0xa06   :  { %v2479_v2 = vadd.f32 %v3174_v34, %v2478_v1 }
 0xa07   :  { %2506 = vst [vmem:[%s3370_s6 + $0x98] sm:$0xff] %v2484_v0 }
 0xa08   :  { %2496 = vst [vmem:[%s3370_s6 + $0x48] sm:$0xff] %v2479_v2 }

</bundles_post_ra>
